<compile_context>
chip_gen: v7x
topology: tpu7x:2x2x1
jax: 0.10.0
libtpu: 0.0.40
codegen_flags: <defaults>
</compile_context>

<pallas_src>
import functools

import jax
import jax.numpy as jnp
from jax.experimental import pallas as pl
from jax.experimental.pallas import tpu as pltpu

LN_EPS = 1e-5                       # nn.LayerNorm default
_VMEM_LIMIT_BYTES = 40 * 1024 * 1024  # < v7x physical (64 MiB); raises v5e/v6e scoped default


def _round_up(n, m):
    return ((n + m - 1) // m) * m


def improve_residual_block_kernel(x_ref, vec_ref, w1_ref, b1_ref, w2_ref, out_ref,
                                  *, matmul_dtype):
    """vec_ref rows: [ln_gamma, ln_beta, linear2_bias], each of length input_shape."""
    x = x_ref[...].astype(jnp.float32)
    vec = vec_ref[...]
    ln_g = vec[0:1, :]
    ln_b = vec[1:2, :]
    b2 = vec[2:3, :]

    # LayerNorm (f32). Fused single pass: E[x] and E[x^2], var = E[x^2] - mu^2.
    mu = jnp.mean(x, axis=-1, keepdims=True)
    ex2 = jnp.mean(x * x, axis=-1, keepdims=True)
    var = ex2 - mu * mu
    h = (x - mu) * jax.lax.rsqrt(var + LN_EPS) * ln_g + ln_b

    # Linear1 -> ReLU -> Linear2 on the MXU (bf16 operands by default, f32 accumulation).
    h = jnp.dot(h.astype(matmul_dtype), w1_ref[...],
                preferred_element_type=jnp.float32) + b1_ref[...]
    h = jnp.maximum(h, 0.0)
    h = jnp.dot(h.astype(matmul_dtype), w2_ref[...],
                preferred_element_type=jnp.float32) + b2

    # residual add (f32)
    out_ref[...] = (h + x).astype(out_ref.dtype)


def _choose_batch_tile(B, tile_cap):
    """Batch tile selection.

    Small batches: a single grid step (full-dim block is always legal) -- no forced split,
    the extra step is pure overhead on a single-TC chip. Larger batches: ~256-512-row tiles
    so BlockSpec double-buffering overlaps the x-fetch / out-writeback with compute, and an
    even step count so v7x's two TensorCores stay balanced on the (only) parallel axis.
    """
    if B <= min(tile_cap, 256):
        return B
    tile = min(tile_cap, 512 if B >= 2048 else 256, _round_up(B, 8))
    steps = -(-B // tile)
    if steps > 1 and steps % 2:
        steps += 1
        tile = min(tile_cap, _round_up(-(-B // steps), 8))
    return max(8, tile)


def improve_residual_block_forward(x, params, *, batch_tile=1024,
                                   matmul_dtype=jnp.bfloat16, out_dtype=None):
    """x: (B, input_shape); f32 by default (bf16 x is the opt-in low-HBM-traffic path).

    params: ln_g, ln_b (1, input_shape); w1 (input_shape, hidden_shape); b1 (1, hidden_shape);
            w2 (hidden_shape, input_shape); b2 (1, input_shape).
    """
    B, Hin = x.shape
    Hh = params["w1"].shape[1]
    assert params["w1"].shape == (Hin, Hh)
    assert params["w2"].shape == (Hh, Hin)
    out_dtype = x.dtype if out_dtype is None else jnp.dtype(out_dtype)

    # Merge the input_shape-wide per-feature vectors into one block (fewer param DMAs).
    vec = jnp.stack(
        [params["ln_g"].reshape(Hin),
         params["ln_b"].reshape(Hin),
         params["b2"].reshape(Hin)], axis=0).astype(jnp.float32)
    b1 = params["b1"].reshape(1, Hh).astype(jnp.float32)
    w1 = params["w1"].astype(matmul_dtype)   # one-time cast; matmul operands only
    w2 = params["w2"].astype(matmul_dtype)

    # Batch tile from a VMEM budget (conservative: assume double-buffered params and add
    # f32-intermediate headroom), capped at 3/4 of the scoped limit we request.
    mm_item = jnp.dtype(matmul_dtype).itemsize
    x_item = jnp.dtype(x.dtype).itemsize
    o_item = jnp.dtype(out_dtype).itemsize
    budget = (_VMEM_LIMIT_BYTES * 3) // 4
    param_bytes = 2 * ((3 * Hin + Hh) * 4 + 2 * Hin * Hh * mm_item)
    per_row = 2 * Hin * (x_item + o_item) + 4 * (2 * Hin + 2 * Hh)
    tile_cap = max(8, ((budget - param_bytes) // per_row) // 8 * 8)
    tile_cap = min(tile_cap, max(8, batch_tile))

    tile = _choose_batch_tile(B, tile_cap)
    grid = (pl.cdiv(B, tile),)   # ragged last block handled by Pallas; no padding / slicing

    kernel = functools.partial(improve_residual_block_kernel, matmul_dtype=matmul_dtype)

    def run(single_buffer_params):
        if single_buffer_params:
            def param_spec(shape):
                return pl.BlockSpec(shape, lambda i: (0, 0), pipeline_mode=pl.Buffered(1))
        else:
            def param_spec(shape):
                return pl.BlockSpec(shape, lambda i: (0, 0))
        out = pl.pallas_call(
            kernel,
            out_shape=jax.ShapeDtypeStruct((B, Hin), out_dtype),
            grid_spec=pltpu.PrefetchScalarGridSpec(
                num_scalar_prefetch=0,
                grid=grid,
                in_specs=[
                    pl.BlockSpec((tile, Hin), lambda i: (i, 0)),   # x (batch-tiled)
                    param_spec((3, Hin)),                          # [ln_g, ln_b, b2]
                    param_spec((Hin, Hh)),                         # w1
                    param_spec((1, Hh)),                           # b1
                    param_spec((Hh, Hin)),                         # w2
                ],
                out_specs=pl.BlockSpec((tile, Hin), lambda i: (i, 0)),
            ),
            compiler_params=pltpu.CompilerParams(
                dimension_semantics=("parallel",),
                vmem_limit_bytes=_VMEM_LIMIT_BYTES,
            ),
        )(x, vec, w1, b1, w2)
        return jax.block_until_ready(out)

    try:
        return run(True)
    except Exception:   # noqa: BLE001 - older Pallas may reject pipeline_mode=Buffered(1)
        return run(False)


def init_params(key, input_shape, hidden_shape):
    """PyTorch-like init: LayerNorm(gamma=1, beta=0); Linear uniform(+/- 1/sqrt(fan_in))."""
    k1, k2 = jax.random.split(key)

    def linear(k, fan_in, fan_out):
        bound = 1.0 / float(fan_in) ** 0.5
        kw, kb = jax.random.split(k)
        w = jax.random.uniform(kw, (fan_in, fan_out), jnp.float32, -bound, bound)
        b = jax.random.uniform(kb, (1, fan_out), jnp.float32, -bound, bound)
        return w, b

    w1, b1 = linear(k1, input_shape, hidden_shape)
    w2, b2 = linear(k2, hidden_shape, input_shape)
    return dict(
        ln_g=jnp.ones((1, input_shape), jnp.float32),
        ln_b=jnp.zeros((1, input_shape), jnp.float32),
        w1=w1, b1=b1, w2=w2, b2=b2,
    )


def reference_forward(x, p):
    """Pure-JAX reference (matches nn.LayerNorm + nn.Linear eval semantics)."""
    mu = x.mean(-1, keepdims=True)
    var = ((x - mu) ** 2).mean(-1, keepdims=True)
    h = (x - mu) / jnp.sqrt(var + LN_EPS) * p["ln_g"] + p["ln_b"]
    h = jnp.maximum(h @ p["w1"] + p["b1"], 0.0)
    return h @ p["w2"] + p["b2"] + x


if __name__ == "__main__":
    INPUT_SHAPE = 128   # input_shape of the block (lane-dense feature width)
    HIDDEN_SHAPE = 128  # hidden_shape of the block

    key = jax.random.PRNGKey(0)
    k_x, k_x2, k_p = jax.random.split(key, 3)
    params = init_params(k_p, INPUT_SHAPE, HIDDEN_SHAPE)

    # --- small batch: single grid step, full-dim block ---
    x = jax.random.normal(k_x, (64, INPUT_SHAPE), jnp.float32)
    ref = reference_forward(x, params)

    # f32-operand matmul path (tight check)
    out_f32 = improve_residual_block_forward(x, params, matmul_dtype=jnp.float32)
    assert out_f32.shape == (64, INPUT_SHAPE)
    assert jnp.allclose(out_f32, ref, atol=1e-2, rtol=1e-3), "f32 kernel mismatch vs reference"

    # default bf16-operand matmul path (f32 accumulation) — relative-error check
    out_bf = improve_residual_block_forward(x, params)
    rel = float(jnp.max(jnp.abs(out_bf - ref)) / jnp.max(jnp.abs(ref)))
    assert rel < 3e-2, f"bf16-matmul relative error too large: {rel}"
    assert jnp.allclose(out_bf, ref, atol=1e-1, rtol=2e-2), "bf16 kernel mismatch vs reference"

    # --- non-divisible larger batch: ragged last block, even step count, no padding ---
    xl = jax.random.normal(k_x2, (1037, INPUT_SHAPE), jnp.float32)
    refl = reference_forward(xl, params)
    outl = improve_residual_block_forward(xl, params)
    assert outl.shape == (1037, INPUT_SHAPE)
    rel_l = float(jnp.max(jnp.abs(outl - refl)) / jnp.max(jnp.abs(refl)))
    assert rel_l < 3e-2, f"ragged-batch relative error too large: {rel_l}"

    # --- opt-in bf16 I/O path (halves x/out HBM bytes; LN/residual still f32 inside) ---
    x_bf16 = x.astype(jnp.bfloat16)
    ref_io = reference_forward(x_bf16.astype(jnp.float32), params)
    out_io = improve_residual_block_forward(x_bf16, params)
    assert out_io.dtype == jnp.bfloat16
    assert jnp.allclose(out_io.astype(jnp.float32), ref_io, atol=2e-1, rtol=5e-2), \
        "bf16-I/O kernel mismatch vs reference"

    print("KERNEL_OK")
</pallas_src>

<mosaic_0001>
module attributes {stable_mosaic.version = 11 : i64} {
  func.func @improve_residual_block_kernel(%arg0: i32, %arg1: memref<64x128xf32, #tpu.memory_space<vmem>>, %arg2: memref<3x128xf32, #tpu.memory_space<vmem>>, %arg3: memref<128x128xf32, #tpu.memory_space<vmem>>, %arg4: memref<1x128xf32, #tpu.memory_space<vmem>>, %arg5: memref<128x128xf32, #tpu.memory_space<vmem>>, %arg6: memref<64x128xf32, #tpu.memory_space<vmem>>) attributes {dimension_semantics = [#tpu.dimension_semantics<parallel>], iteration_bounds = array<i64: 1>, scalar_prefetch = 0 : i64, scratch_operands = 0 : i64, tpu.core_type = #tpu.core_type<tc>, window_params = [{transform_indices = @transform_0, window_bounds = array<i64: 64, 128>}, {pipeline_mode = #tpu.pipeline_mode<synchronous>, transform_indices = @transform_1, window_bounds = array<i64: 3, 128>}, {pipeline_mode = #tpu.pipeline_mode<synchronous>, transform_indices = @transform_2, window_bounds = array<i64: 128, 128>}, {pipeline_mode = #tpu.pipeline_mode<synchronous>, transform_indices = @transform_3, window_bounds = array<i64: 1, 128>}, {pipeline_mode = #tpu.pipeline_mode<synchronous>, transform_indices = @transform_4, window_bounds = array<i64: 128, 128>}, {transform_indices = @transform_5, window_bounds = array<i64: 64, 128>}]} {
    %c0 = arith.constant 0 : index
    %c0_0 = arith.constant 0 : index
    %0 = vector.load %arg1[%c0, %c0_0] : memref<64x128xf32, #tpu.memory_space<vmem>>, vector<64x128xf32>
    %c0_1 = arith.constant 0 : index
    %c0_2 = arith.constant 0 : index
    %1 = vector.load %arg2[%c0_1, %c0_2] : memref<3x128xf32, #tpu.memory_space<vmem>>, vector<3x128xf32>
    %2 = vector.extract_strided_slice %1 {offsets = [0, 0], sizes = [1, 128], strides = [1, 1]} : vector<3x128xf32> to vector<1x128xf32>
    %3 = vector.extract_strided_slice %1 {offsets = [1, 0], sizes = [1, 128], strides = [1, 1]} : vector<3x128xf32> to vector<1x128xf32>
    %4 = vector.extract_strided_slice %1 {offsets = [2, 0], sizes = [1, 128], strides = [1, 1]} : vector<3x128xf32> to vector<1x128xf32>
    %cst = arith.constant dense<0.000000e+00> : vector<64xf32>
    %5 = vector.multi_reduction <add>, %0, %cst [1] : vector<64x128xf32> to vector<64xf32>
    %6 = vector.shape_cast %5 : vector<64xf32> to vector<64x1xf32>
    %cst_3 = arith.constant 1.280000e+02 : f32
    %7 = vector.broadcast %cst_3 : f32 to vector<64x1xf32>
    %8 = arith.divf %6, %7 : vector<64x1xf32>
    %9 = arith.mulf %0, %0 : vector<64x128xf32>
    %cst_4 = arith.constant dense<0.000000e+00> : vector<64xf32>
    %10 = vector.multi_reduction <add>, %9, %cst_4 [1] : vector<64x128xf32> to vector<64xf32>
    %11 = vector.shape_cast %10 : vector<64xf32> to vector<64x1xf32>
    %cst_5 = arith.constant 1.280000e+02 : f32
    %12 = vector.broadcast %cst_5 : f32 to vector<64x1xf32>
    %13 = arith.divf %11, %12 : vector<64x1xf32>
    %14 = arith.mulf %8, %8 : vector<64x1xf32>
    %15 = arith.subf %13, %14 : vector<64x1xf32>
    %16 = vector.broadcast %8 : vector<64x1xf32> to vector<64x128xf32>
    %17 = arith.subf %0, %16 : vector<64x128xf32>
    %cst_6 = arith.constant 9.99999974E-6 : f32
    %18 = vector.broadcast %cst_6 : f32 to vector<64x1xf32>
    %19 = arith.addf %15, %18 : vector<64x1xf32>
    %20 = math.rsqrt %19 : vector<64x1xf32>
    %21 = vector.broadcast %20 : vector<64x1xf32> to vector<64x128xf32>
    %22 = arith.mulf %17, %21 : vector<64x128xf32>
    %23 = vector.broadcast %2 : vector<1x128xf32> to vector<64x128xf32>
    %24 = arith.mulf %22, %23 : vector<64x128xf32>
    %25 = vector.broadcast %3 : vector<1x128xf32> to vector<64x128xf32>
    %26 = arith.addf %24, %25 : vector<64x128xf32>
    %c0_7 = arith.constant 0 : index
    %c0_8 = arith.constant 0 : index
    %27 = vector.load %arg3[%c0_7, %c0_8] : memref<128x128xf32, #tpu.memory_space<vmem>>, vector<128x128xf32>
    %cst_9 = arith.constant dense<0.000000e+00> : vector<64x128xf32>
    %28 = tpu.matmul %26, %27, %cst_9 {dimension_numbers = #tpu.dot_dimension_numbers<[1], [0], [0], [1], [0, 0, 1, 1], [], []>} : vector<64x128xf32>, vector<128x128xf32>, vector<64x128xf32> -> vector<64x128xf32>
    %c0_10 = arith.constant 0 : index
    %c0_11 = arith.constant 0 : index
    %29 = vector.load %arg4[%c0_10, %c0_11] : memref<1x128xf32, #tpu.memory_space<vmem>>, vector<1x128xf32>
    %30 = vector.broadcast %29 : vector<1x128xf32> to vector<64x128xf32>
    %31 = arith.addf %28, %30 : vector<64x128xf32>
    %cst_12 = arith.constant 0.000000e+00 : f32
    %32 = vector.broadcast %cst_12 : f32 to vector<64x128xf32>
    %33 = arith.maximumf %31, %32 : vector<64x128xf32>
    %c0_13 = arith.constant 0 : index
    %c0_14 = arith.constant 0 : index
    %34 = vector.load %arg5[%c0_13, %c0_14] : memref<128x128xf32, #tpu.memory_space<vmem>>, vector<128x128xf32>
    %cst_15 = arith.constant dense<0.000000e+00> : vector<64x128xf32>
    %35 = tpu.matmul %33, %34, %cst_15 {dimension_numbers = #tpu.dot_dimension_numbers<[1], [0], [0], [1], [0, 0, 1, 1], [], []>} : vector<64x128xf32>, vector<128x128xf32>, vector<64x128xf32> -> vector<64x128xf32>
    %36 = vector.broadcast %4 : vector<1x128xf32> to vector<64x128xf32>
    %37 = arith.addf %35, %36 : vector<64x128xf32>
    %38 = arith.addf %37, %0 : vector<64x128xf32>
    %c0_16 = arith.constant 0 : index
    %c0_17 = arith.constant 0 : index
    %39 = vector.load %arg6[%c0_16, %c0_17] : memref<64x128xf32, #tpu.memory_space<vmem>>, vector<64x128xf32>
    tpu.vector_store %arg6[%c0_16, %c0_17], %38 {strides = array<i32>} : memref<64x128xf32, #tpu.memory_space<vmem>>, vector<64x128xf32>,
    return
  }
  func.func @transform_0(%arg0: i32) -> (i32, i32) {
    %c0_i32 = arith.constant 0 : i32
    %c0_i32_0 = arith.constant 0 : i32
    return %arg0, %c0_i32 : i32, i32
  }
  func.func @transform_1(%arg0: i32) -> (i32, i32) {
    %c0_i32 = arith.constant 0 : i32
    %c0_i32_0 = arith.constant 0 : i32
    %c0_i32_1 = arith.constant 0 : i32
    return %c0_i32, %c0_i32_0 : i32, i32
  }
  func.func @transform_2(%arg0: i32) -> (i32, i32) {
    %c0_i32 = arith.constant 0 : i32
    %c0_i32_0 = arith.constant 0 : i32
    %c0_i32_1 = arith.constant 0 : i32
    return %c0_i32, %c0_i32_0 : i32, i32
  }
  func.func @transform_3(%arg0: i32) -> (i32, i32) {
    %c0_i32 = arith.constant 0 : i32
    %c0_i32_0 = arith.constant 0 : i32
    %c0_i32_1 = arith.constant 0 : i32
    return %c0_i32, %c0_i32_0 : i32, i32
  }
  func.func @transform_4(%arg0: i32) -> (i32, i32) {
    %c0_i32 = arith.constant 0 : i32
    %c0_i32_0 = arith.constant 0 : i32
    %c0_i32_1 = arith.constant 0 : i32
    return %c0_i32, %c0_i32_0 : i32, i32
  }
  func.func @transform_5(%arg0: i32) -> (i32, i32) {
    %c0_i32 = arith.constant 0 : i32
    %c0_i32_0 = arith.constant 0 : i32
    return %arg0, %c0_i32 : i32, i32
  }
}

module attributes {stable_mosaic.version = 11 : i64} {
  func.func @improve_residual_block_kernel(%arg0: i32, %arg1: memref<64x128xf32, #tpu.memory_space<vmem>>, %arg2: memref<3x128xf32, #tpu.memory_space<vmem>>, %arg3: memref<128x128xf32, #tpu.memory_space<vmem>>, %arg4: memref<1x128xf32, #tpu.memory_space<vmem>>, %arg5: memref<128x128xf32, #tpu.memory_space<vmem>>, %arg6: memref<64x128xf32, #tpu.memory_space<vmem>>) attributes {dimension_semantics = [#tpu.dimension_semantics<parallel>], iteration_bounds = array<i64: 1>, scalar_prefetch = 0 : i64, scratch_operands = 0 : i64, tpu.core_type = #tpu.core_type<tc>, window_params = [{transform_indices = @transform_0, window_bounds = array<i64: 64, 128>}, {pipeline_mode = #tpu.pipeline_mode<synchronous>, transform_indices = @transform_1, window_bounds = array<i64: 3, 128>}, {pipeline_mode = #tpu.pipeline_mode<synchronous>, transform_indices = @transform_2, window_bounds = array<i64: 128, 128>}, {pipeline_mode = #tpu.pipeline_mode<synchronous>, transform_indices = @transform_3, window_bounds = array<i64: 1, 128>}, {pipeline_mode = #tpu.pipeline_mode<synchronous>, transform_indices = @transform_4, window_bounds = array<i64: 128, 128>}, {transform_indices = @transform_5, window_bounds = array<i64: 64, 128>}]} {
    %c0 = arith.constant 0 : index
    %c0_0 = arith.constant 0 : index
    %0 = vector.load %arg1[%c0, %c0_0] : memref<64x128xf32, #tpu.memory_space<vmem>>, vector<64x128xf32>
    %c0_1 = arith.constant 0 : index
    %c0_2 = arith.constant 0 : index
    %1 = vector.load %arg2[%c0_1, %c0_2] : memref<3x128xf32, #tpu.memory_space<vmem>>, vector<3x128xf32>
    %2 = vector.extract_strided_slice %1 {offsets = [0, 0], sizes = [1, 128], strides = [1, 1]} : vector<3x128xf32> to vector<1x128xf32>
    %3 = vector.extract_strided_slice %1 {offsets = [1, 0], sizes = [1, 128], strides = [1, 1]} : vector<3x128xf32> to vector<1x128xf32>
    %4 = vector.extract_strided_slice %1 {offsets = [2, 0], sizes = [1, 128], strides = [1, 1]} : vector<3x128xf32> to vector<1x128xf32>
    %cst = arith.constant dense<0.000000e+00> : vector<64xf32>
    %5 = vector.multi_reduction <add>, %0, %cst [1] : vector<64x128xf32> to vector<64xf32>
    %6 = vector.shape_cast %5 : vector<64xf32> to vector<64x1xf32>
    %cst_3 = arith.constant 1.280000e+02 : f32
    %7 = vector.broadcast %cst_3 : f32 to vector<64x1xf32>
    %8 = arith.divf %6, %7 : vector<64x1xf32>
    %9 = arith.mulf %0, %0 : vector<64x128xf32>
    %cst_4 = arith.constant dense<0.000000e+00> : vector<64xf32>
    %10 = vector.multi_reduction <add>, %9, %cst_4 [1] : vector<64x128xf32> to vector<64xf32>
    %11 = vector.shape_cast %10 : vector<64xf32> to vector<64x1xf32>
    %cst_5 = arith.constant 1.280000e+02 : f32
    %12 = vector.broadcast %cst_5 : f32 to vector<64x1xf32>
    %13 = arith.divf %11, %12 : vector<64x1xf32>
    %14 = arith.mulf %8, %8 : vector<64x1xf32>
    %15 = arith.subf %13, %14 : vector<64x1xf32>
    %16 = vector.broadcast %8 : vector<64x1xf32> to vector<64x128xf32>
    %17 = arith.subf %0, %16 : vector<64x128xf32>
    %cst_6 = arith.constant 9.99999974E-6 : f32
    %18 = vector.broadcast %cst_6 : f32 to vector<64x1xf32>
    %19 = arith.addf %15, %18 : vector<64x1xf32>
    %20 = math.rsqrt %19 : vector<64x1xf32>
    %21 = vector.broadcast %20 : vector<64x1xf32> to vector<64x128xf32>
    %22 = arith.mulf %17, %21 : vector<64x128xf32>
    %23 = vector.broadcast %2 : vector<1x128xf32> to vector<64x128xf32>
    %24 = arith.mulf %22, %23 : vector<64x128xf32>
    %25 = vector.broadcast %3 : vector<1x128xf32> to vector<64x128xf32>
    %26 = arith.addf %24, %25 : vector<64x128xf32>
    %c0_7 = arith.constant 0 : index
    %c0_8 = arith.constant 0 : index
    %27 = vector.load %arg3[%c0_7, %c0_8] : memref<128x128xf32, #tpu.memory_space<vmem>>, vector<128x128xf32>
    %cst_9 = arith.constant dense<0.000000e+00> : vector<64x128xf32>
    %28 = tpu.matmul %26, %27, %cst_9 {dimension_numbers = #tpu.dot_dimension_numbers<[1], [0], [0], [1], [0, 0, 1, 1], [], []>} : vector<64x128xf32>, vector<128x128xf32>, vector<64x128xf32> -> vector<64x128xf32>
    %c0_10 = arith.constant 0 : index
    %c0_11 = arith.constant 0 : index
    %29 = vector.load %arg4[%c0_10, %c0_11] : memref<1x128xf32, #tpu.memory_space<vmem>>, vector<1x128xf32>
    %30 = vector.broadcast %29 : vector<1x128xf32> to vector<64x128xf32>
    %31 = arith.addf %28, %30 : vector<64x128xf32>
    %cst_12 = arith.constant 0.000000e+00 : f32
    %32 = vector.broadcast %cst_12 : f32 to vector<64x128xf32>
    %33 = arith.maximumf %31, %32 : vector<64x128xf32>
    %c0_13 = arith.constant 0 : index
    %c0_14 = arith.constant 0 : index
    %34 = vector.load %arg5[%c0_13, %c0_14] : memref<128x128xf32, #tpu.memory_space<vmem>>, vector<128x128xf32>
    %cst_15 = arith.constant dense<0.000000e+00> : vector<64x128xf32>
    %35 = tpu.matmul %33, %34, %cst_15 {dimension_numbers = #tpu.dot_dimension_numbers<[1], [0], [0], [1], [0, 0, 1, 1], [], []>} : vector<64x128xf32>, vector<128x128xf32>, vector<64x128xf32> -> vector<64x128xf32>
    %36 = vector.broadcast %4 : vector<1x128xf32> to vector<64x128xf32>
    %37 = arith.addf %35, %36 : vector<64x128xf32>
    %38 = arith.addf %37, %0 : vector<64x128xf32>
    %c0_16 = arith.constant 0 : index
    %c0_17 = arith.constant 0 : index
    %39 = vector.load %arg6[%c0_16, %c0_17] : memref<64x128xf32, #tpu.memory_space<vmem>>, vector<64x128xf32>
    tpu.vector_store %arg6[%c0_16, %c0_17], %38 {strides = array<i32>} : memref<64x128xf32, #tpu.memory_space<vmem>>, vector<64x128xf32>,
    return
  }
  func.func @transform_0(%arg0: i32) -> (i32, i32) {
    %c0_i32 = arith.constant 0 : i32
    %c0_i32_0 = arith.constant 0 : i32
    return %arg0, %c0_i32 : i32, i32
  }
  func.func @transform_1(%arg0: i32) -> (i32, i32) {
    %c0_i32 = arith.constant 0 : i32
    %c0_i32_0 = arith.constant 0 : i32
    %c0_i32_1 = arith.constant 0 : i32
    return %c0_i32, %c0_i32_0 : i32, i32
  }
  func.func @transform_2(%arg0: i32) -> (i32, i32) {
    %c0_i32 = arith.constant 0 : i32
    %c0_i32_0 = arith.constant 0 : i32
    %c0_i32_1 = arith.constant 0 : i32
    return %c0_i32, %c0_i32_0 : i32, i32
  }
  func.func @transform_3(%arg0: i32) -> (i32, i32) {
    %c0_i32 = arith.constant 0 : i32
    %c0_i32_0 = arith.constant 0 : i32
    %c0_i32_1 = arith.constant 0 : i32
    return %c0_i32, %c0_i32_0 : i32, i32
  }
  func.func @transform_4(%arg0: i32) -> (i32, i32) {
    %c0_i32 = arith.constant 0 : i32
    %c0_i32_0 = arith.constant 0 : i32
    %c0_i32_1 = arith.constant 0 : i32
    return %c0_i32, %c0_i32_0 : i32, i32
  }
  func.func @transform_5(%arg0: i32) -> (i32, i32) {
    %c0_i32 = arith.constant 0 : i32
    %c0_i32_0 = arith.constant 0 : i32
    return %arg0, %c0_i32 : i32, i32
  }
}

</mosaic_0001>

<bundles_post_ra>
// kernel: tpu_custom_call.1
= control target key start
LH: loop header
LB: loop body
LE: loop exit
PB: predicated region body
PF: predicated region fallthrough
CT: control target
= control target key end

     0   :  { %10 = vsyncpa [#allocation3], 0  ;;  %s1082_s0 = inlined_call_operand.hbm [shape: f32[64,128], index: 0, kind: input, shape index: {}]   ;;  %s1083_s1 = inlined_call_operand.hbm [shape: f32[3,128], index: 1, kind: input, shape index: {}]   ;;  %s1084_s2 = inlined_call_operand.hbm [shape: f32[128,128], index: 2, kind: input, shape index: {}]   ;;  %s1085_s3 = inlined_call_operand.vmem [shape: f32[1,128], index: 3, kind: input, shape index: {}]   ;;  %s1086_s4 = inlined_call_operand.hbm [shape: f32[128,128], index: 4, kind: input, shape index: {}]   ;;  %s1087_s5 = inlined_call_operand.hbm [shape: f32[64,128], index: 5, kind: output, shape index: {}]  }
   0x1   :  { %11 = vsyncpa [#allocation6], 0 }
   0x2   :  { %12 = vsyncpa [#allocation9], 0 }
   0x3   :  { %13 = vsyncpa [#allocation4], 0  ;;  %s850_s18 = smov [#allocation5]   ;;  %s851_s20 = smov [#allocation2]  }
   0x4   :  { %s32_s19 = sshll.u32 %s850_s18, 4  ;;  %s19_s21 = sshll.u32 %s851_s20, 4  ;;  %s33_s19 = int_to_ptr.vmem [resolvable:$true] %s32_s19  ;;  %s887_s21 = int_to_ptr.vmem [resolvable:$true] %s19_s21 }
   0x5   :  { %s732_s24 = scalar_lea.hbm %s1083_s1, 64 }
   0x6   :  { %p733_p0 = scmp.ne.s32.totalorder %s1083_s1, %s732_s24  ;;  %p736_p1 = scmp.lt.u32.totalorder %s732_s24, %s1083_s1 }
   0x8   :  { %p738_p2 = pnand %p736_p1, %p733_p0 }
   0xa   :  { %741 = shalt.err (!%p738_p2)
}
   0xb   :  { %s742_s29 = scalar_lea.vmem %s33_s19, 64  ;;  %p747_p4 = scmp.lt.s32.totalorder %s33_s19, %s33_s19 }
   0xc   :  { %p743_p3 = scmp.ne.s32.totalorder %s33_s19, %s742_s29  ;;  %p748_p5 = scmp.lt.s32.totalorder %s742_s29, %s742_s29 }
   0xe   :  { %p749_p6 = por %p748_p5, %p747_p4 }
  0x10   :  { %p750_p7 = pnand %p749_p6, %p743_p3 }
  0x12   :  { %753 = shalt.err (!%p750_p7)
}
  0x13   :  { %35 = dma.hbm_to_vmem [thread:$0]  %s1083_s1, 64, %s33_s19, [#allocation6]  }
  0x14   :  { %s754_s9 = scalar_lea.hbm %s1082_s0, 1024 }
  0x15   :  { %p755_p8 = scmp.ne.s32.totalorder %s1082_s0, %s754_s9  ;;  %p758_p9 = scmp.lt.u32.totalorder %s754_s9, %s1082_s0 }
  0x17   :  { %p760_p10 = pnand %p758_p9, %p755_p8 }
  0x19   :  { %763 = shalt.err (!%p760_p10)
}
  0x1a   :  { %s764_s14 = scalar_lea.vmem %s887_s21, 1024  ;;  %p769_p12 = scmp.lt.s32.totalorder %s887_s21, %s887_s21 }
  0x1b   :  { %p765_p11 = scmp.ne.s32.totalorder %s887_s21, %s764_s14  ;;  %p770_p13 = scmp.lt.s32.totalorder %s764_s14, %s764_s14 }
  0x1d   :  { %p771_p0 = por %p770_p13, %p769_p12 }
  0x1f   :  { %p772_p1 = pnand %p771_p0, %p765_p11 }
  0x21   :  { %775 = shalt.err (!%p772_p1)
}
  0x22   :  { %s852_s1 = smov 128   ;;  %s853_s15 = smov 8  }
  0x23   :  { %25 = dma.hbm_to_vmem [thread:$0]  %s1082_s0, 1024, %s887_s21, [#allocation3], %s852_s1, %s852_s1, %s853_s15  }
  0x24   :  { %s854_s18 = smov [#allocation7]   ;;  %s855_s20 = smov [#allocation8]  }
  0x25   :  { %s41_s19 = sshll.u32 %s854_s18, 4  ;;  %s55_s22 = sshll.u32 %s855_s20, 4  ;;  %s42_s19 = int_to_ptr.vmem [resolvable:$true] %s41_s19  ;;  %s921_s22 = int_to_ptr.vmem [resolvable:$true] %s55_s22 }
  0x26   :  { %s776_s25 = scalar_lea.hbm %s1084_s2, 2048 }
  0x27   :  { %p777_p2 = scmp.ne.s32.totalorder %s1084_s2, %s776_s25  ;;  %p780_p3 = scmp.lt.u32.totalorder %s776_s25, %s1084_s2 }
  0x29   :  { %p782_p4 = pnand %p780_p3, %p777_p2 }
  0x2b   :  { %785 = shalt.err (!%p782_p4)
}
  0x2c   :  { %s786_s0 = scalar_lea.vmem %s42_s19, 2048  ;;  %p791_p6 = scmp.lt.s32.totalorder %s42_s19, %s42_s19 }
  0x2d   :  { %p787_p5 = scmp.ne.s32.totalorder %s42_s19, %s786_s0  ;;  %p792_p7 = scmp.lt.s32.totalorder %s786_s0, %s786_s0 }
  0x2f   :  { %p793_p8 = por %p792_p7, %p791_p6 }
  0x31   :  { %p794_p9 = pnand %p793_p8, %p787_p5 }
  0x33   :  { %797 = shalt.err (!%p794_p9)
}
  0x34   :  { %47 = dma.hbm_to_vmem [thread:$0]  %s1084_s2, 2048, %s42_s19, [#allocation6], %s852_s1, %s852_s1, %s853_s15  }
  0x35   :  { %s798_s8 = scalar_lea.hbm %s1086_s4, 2048 }
  0x36   :  { %p799_p10 = scmp.ne.s32.totalorder %s1086_s4, %s798_s8  ;;  %p802_p11 = scmp.lt.u32.totalorder %s798_s8, %s1086_s4 }
  0x38   :  { %p804_p12 = pnand %p802_p11, %p799_p10 }
  0x3a   :  { %807 = shalt.err (!%p804_p12)
}
  0x3b   :  { %s808_s13 = scalar_lea.vmem %s921_s22, 2048  ;;  %p813_p0 = scmp.lt.s32.totalorder %s921_s22, %s921_s22 }
  0x3c   :  { %p809_p13 = scmp.ne.s32.totalorder %s921_s22, %s808_s13  ;;  %p814_p1 = scmp.lt.s32.totalorder %s808_s13, %s808_s13 }
  0x3e   :  { %p815_p2 = por %p814_p1, %p813_p0 }
  0x40   :  { %p816_p3 = pnand %p815_p2, %p809_p13 }
  0x42   :  { %819 = shalt.err (!%p816_p3)
}
  0x43   :  { %61 = dma.hbm_to_vmem [thread:$0]  %s1086_s4, 2048, %s921_s22, [#allocation9], %s852_s1, %s852_s1, %s853_s15  }
  0x44   :  { %842 = dma.done.wait [#allocation3], 1024  }
  0x45   :  { %843 = vsyncadd [#allocation3], 4294966272 }
  0x46   :  { %844 = dma.done.wait [#allocation6], 2112  }
  0x47   :  { %845 = vsyncadd [#allocation6], 4294965184 }
  0x48   :  { %846 = dma.done.wait [#allocation9], 2048  }
  0x49   :  { %847 = vsyncadd [#allocation9], 4294965248  ;;  %v958_v0 = vld [vmem:[#allocation2 + $0x18] sm:$0xff]  ;;  %v960_v1 = vld [vmem:[#allocation2] sm:$0xff] }
  0x4a   :  { %89 = vadd.xlane.f32.xlu1 %v958_v0  ;;  %83 = vadd.xlane.f32.xlu0 %v960_v1  ;;  %v108_v2 = vmul.f32 %v960_v1, %v960_v1  ;;  %v966_v3 = vld [vmem:[#allocation2 + $0x8] sm:$0xff]  ;;  %v971_v8 = vld [vmem:[#allocation2 + $0x10] sm:$0xff]  ;;  %v111_v10 = vmul.f32 %v958_v0, %v958_v0  ;;  %v978_v11 = vld [vmem:[#allocation2 + $0x20] sm:$0xff] }
  0x4b   :  { %v212_v4 = vld [vmem:[#allocation7] sm:$0xff]  ;;  %v213_v5 = vld [vmem:[#allocation7 + $0x8] sm:$0xff]  ;;  %v109_v7 = vmul.f32 %v966_v3, %v966_v3  ;;  %v110_v9 = vmul.f32 %v971_v8, %v971_v8  ;;  %v214_v13 = vld [vmem:[#allocation7 + $0x10] sm:$0xff]  ;;  %v112_v16 = vmul.f32 %v978_v11, %v978_v11 }
  0x4c   :  { %v645_v6 = vpack.c.bf16 %v213_v5, %v212_v4  ;;  %v980_v12 = vld [vmem:[#allocation2 + $0x28] sm:$0xff]  ;;  %v215_v14 = vld [vmem:[#allocation7 + $0x18] sm:$0xff]  ;;  %v988_v21 = vld [vmem:[#allocation2 + $0x30] sm:$0xff] }
  0x4d   :  { %v649_v15 = vpack.c.bf16 %v215_v14, %v214_v13  ;;  %v113_v17 = vmul.f32 %v980_v12, %v980_v12  ;;  %v216_v18 = vld [vmem:[#allocation7 + $0x20] sm:$0xff]  ;;  %v217_v19 = vld [vmem:[#allocation7 + $0x28] sm:$0xff]  ;;  %v990_v22 = vld [vmem:[#allocation2 + $0x38] sm:$0xff]  ;;  %v114_v26 = vmul.f32 %v988_v21, %v988_v21 }
  0x4e   :  { %85 = vadd.xlane.f32.xlu0 %v966_v3  ;;  %116 = vadd.xlane.f32.xlu1 %v108_v2  ;;  %v653_v20 = vpack.c.bf16 %v217_v19, %v216_v18  ;;  %v218_v23 = vld [vmem:[#allocation7 + $0x30] sm:$0xff]  ;;  %v219_v24 = vld [vmem:[#allocation7 + $0x38] sm:$0xff]  ;;  %v115_v27 = vmul.f32 %v990_v22, %v990_v22  ;;  %v220_v28 = vld [vmem:[#allocation7 + $0x40] sm:$0xff] }
  0x4f   :  { %646 = vmatprep.subr.bf16.mxu0 %v645_v6  ;;  %v657_v25 = vpack.c.bf16 %v219_v24, %v218_v23  ;;  %v221_v29 = vld [vmem:[#allocation7 + $0x48] sm:$0xff]  ;;  %v222_v31 = vld [vmem:[#allocation7 + $0x50] sm:$0xff]  ;;  %v223_v32 = vld [vmem:[#allocation7 + $0x58] sm:$0xff] }
  0x50   :  { %648 = vmatpush3.bf16.msra.mxu0 %v645_v6  ;;  %v661_v30 = vpack.c.bf16 %v221_v29, %v220_v28  ;;  %v665_v33 = vpack.c.bf16 %v223_v32, %v222_v31  ;;  %v224_v34 = vld [vmem:[#allocation7 + $0x60] sm:$0xff]  ;;  %v225_v35 = vld [vmem:[#allocation7 + $0x68] sm:$0xff]  ;;  %v226_v37 = vld [vmem:[#allocation7 + $0x70] sm:$0xff] }
  0x51   :  { %650 = vmatprep.subr.bf16.mxu0 %v649_v15  ;;  %v669_v36 = vpack.c.bf16 %v225_v35, %v224_v34  ;;  %v227_v38 = vld [vmem:[#allocation7 + $0x78] sm:$0xff]  ;;  %v348_v40 = vld [vmem:[#allocation8] sm:$0xff]  ;;  %v349_v41 = vld [vmem:[#allocation8 + $0x8] sm:$0xff] }
  0x52   :  { %87 = vadd.xlane.f32.xlu0 %v971_v8  ;;  %118 = vadd.xlane.f32.xlu1 %v109_v7  ;;  %v673_v39 = vpack.c.bf16 %v227_v38, %v226_v37  ;;  %v350_v42 = vld [vmem:[#allocation8 + $0x10] sm:$0xff]  ;;  %v677_v43 = vpack.c.bf16 %v349_v41, %v348_v40  ;;  %v351_v44 = vld [vmem:[#allocation8 + $0x18] sm:$0xff]  ;;  %v352_v46 = vld [vmem:[#allocation8 + $0x20] sm:$0xff] }
  0x53   :  { %v681_v45 = vpack.c.bf16 %v351_v44, %v350_v42  ;;  %v353_v47 = vld [vmem:[#allocation8 + $0x28] sm:$0xff]  ;;  %v354_v49 = vld [vmem:[#allocation8 + $0x30] sm:$0xff]  ;;  %v355_v50 = vld [vmem:[#allocation8 + $0x38] sm:$0xff] }
  0x54   :  { %652 = vmatpush3.bf16.msra.mxu0 %v649_v15  ;;  %678 = vmatprep.subr.bf16.mxu1 %v677_v43  ;;  %v685_v48 = vpack.c.bf16 %v353_v47, %v352_v46  ;;  %v689_v51 = vpack.c.bf16 %v355_v50, %v354_v49  ;;  %v356_v52 = vld [vmem:[#allocation8 + $0x40] sm:$0xff]  ;;  %v357_v53 = vld [vmem:[#allocation8 + $0x48] sm:$0xff]  ;;  %v358_v55 = vld [vmem:[#allocation8 + $0x50] sm:$0xff]  ;;  %v188_v15 = vlaneseq }
  0x55   :  { %654 = vmatprep.subr.bf16.mxu0 %v653_v20  ;;  %680 = vmatpush3.bf16.msra.mxu1 %v677_v43  ;;  %v693_v54 = vpack.c.bf16 %v357_v53, %v356_v52  ;;  %v359_v56 = vld [vmem:[#allocation8 + $0x58] sm:$0xff]  ;;  %v360_v58 = vld [vmem:[#allocation8 + $0x60] sm:$0xff]  ;;  %v361_v59 = vld [vmem:[#allocation8 + $0x68] sm:$0xff] }
  0x56   :  { %120 = vadd.xlane.f32.xlu0 %v110_v9  ;;  %122 = vadd.xlane.f32.xlu1 %v111_v10  ;;  %v697_v57 = vpack.c.bf16 %v359_v56, %v358_v55  ;;  %v701_v60 = vpack.c.bf16 %v361_v59, %v360_v58  ;;  %v1008_v35 = vld [vmem:[#allocation5] sm:$0x7] }
  0x57   :  { %682 = vmatprep.subr.bf16.mxu1 %v681_v45 }
  0x58   :  { %656 = vmatpush3.bf16.msra.mxu0 %v653_v20 }
  0x59   :  { %658 = vmatprep.subr.bf16.mxu0 %v657_v25  ;;  %684 = vmatpush3.bf16.msra.mxu1 %v681_v45 }
  0x5a   :  { %91 = vadd.xlane.f32.xlu0 %v978_v11  ;;  %93 = vadd.xlane.f32.xlu1 %v980_v12 }
  0x5b   :  { %686 = vmatprep.subr.bf16.mxu1 %v685_v48 }
  0x5c   :  { %660 = vmatpush3.bf16.msra.mxu0 %v657_v25 }
  0x5d   :  { %662 = vmatprep.subr.bf16.mxu0 %v661_v30  ;;  %688 = vmatpush3.bf16.msra.mxu1 %v685_v48 }
  0x5e   :  { %124 = vadd.xlane.f32.xlu0 %v112_v16  ;;  %126 = vadd.xlane.f32.xlu1 %v113_v17 }
  0x5f   :  { %690 = vmatprep.subr.bf16.mxu1 %v689_v51 }
  0x60   :  { %664 = vmatpush3.bf16.msra.mxu0 %v661_v30 }
  0x61   :  { %666 = vmatprep.subr.bf16.mxu0 %v665_v33  ;;  %692 = vmatpush3.bf16.msra.mxu1 %v689_v51 }
  0x62   :  { %95 = vadd.xlane.f32.xlu0 %v988_v21  ;;  %97 = vadd.xlane.f32.xlu1 %v990_v22 }
  0x63   :  { %694 = vmatprep.subr.bf16.mxu1 %v693_v54 }
  0x64   :  { %668 = vmatpush3.bf16.msra.mxu0 %v665_v33 }
  0x65   :  { %670 = vmatprep.subr.bf16.mxu0 %v669_v36  ;;  %696 = vmatpush3.bf16.msra.mxu1 %v693_v54 }
  0x66   :  { %128 = vadd.xlane.f32.xlu0 %v114_v26  ;;  %130 = vadd.xlane.f32.xlu1 %v115_v27  ;;  %v1004_v26 = vshrl.u32 %v188_v15, 7 }
  0x67   :  { %698 = vmatprep.subr.bf16.mxu1 %v697_v57 }
  0x68   :  { %672 = vmatpush3.bf16.msra.mxu0 %v669_v36  ;;  %v190_v36 = vsub.s32 0, %v1004_v26  ;;  %v202_v41 = vsub.s32 1, %v1004_v26 }
  0x69   :  { %674 = vmatprep.subr.bf16.mxu0 %v673_v39  ;;  %700 = vmatpush3.bf16.msra.mxu1 %v697_v57 }
  0x6a   :  { %702 = vmatprep.subr.bf16.mxu1 %v701_v60  ;;  %v1020_v46 = vrot.slane %v1008_v35, %v190_v36  ;;  %v1025_v52 = vrot.slane %v1008_v35, %v202_v41 }
  0x6c   :  { %676 = vmatpush3.bf16.msra.mxu0 %v673_v39 }
  0x6d   :  { %704 = vmatpush3.bf16.msra.mxu1 %v701_v60 }
  0xd7   :  { %v90_v61 = vpop.xlane.xlu1 %89  ;;  %v84_v62 = vpop.xlane.xlu0 %83 }
  0xd8   :  { %v100_v63 = vmul.f32 0.0078125, %v84_v62  ;;  %v998_v10 = vmul.f32 0.0078125, %v90_v61 }
  0xda   :  { %v140_v5 = vmul.f32 %v100_v63, %v100_v63  ;;  %v143_v23 = vmul.f32 %v998_v10, %v998_v10  ;;  %v156_v43 = vsub.f32 %v960_v1, %v100_v63  ;;  %v159_v15 = vsub.f32 %v958_v0, %v998_v10 }
  0xdb   :  { %v86_v2 = vpop.xlane.xlu0 %85  ;;  %v117_v4 = vpop.xlane.xlu1 %116 }
  0xdc   :  { %v101_v6 = vmul.f32 0.0078125, %v86_v2  ;;  %v132_v7 = vmul.f32 0.0078125, %v117_v4 }
  0xde   :  { %v148_v9 = vsub.f32 %v132_v7, %v140_v5  ;;  %v141_v16 = vmul.f32 %v101_v6, %v101_v6  ;;  %v157_v55 = vsub.f32 %v966_v3, %v101_v6 }
  0xdf   :  { %v88_v13 = vpop.xlane.xlu0 %87  ;;  %v119_v14 = vpop.xlane.xlu1 %118 }
  0xe0   :  { %v164_v17 = vadd.f32 1e-05, %v148_v9  ;;  %v1000_v18 = vmul.f32 0.0078125, %v88_v13  ;;  %v133_v19 = vmul.f32 0.0078125, %v119_v14 }
  0xe2   :  { %716 = vrsqrt.f32 %v164_v17  ;;  %v149_v20 = vsub.f32 %v133_v19, %v141_v16  ;;  %v142_v27 = vmul.f32 %v1000_v18, %v1000_v18  ;;  %v158_v7 = vsub.f32 %v971_v8, %v1000_v18 }
  0xe3   :  { %v121_v24 = vpop.xlane.xlu0 %120  ;;  %v123_v25 = vpop.xlane.xlu1 %122 }
  0xe4   :  { %v165_v28 = vadd.f32 1e-05, %v149_v20  ;;  %v134_v29 = vmul.f32 0.0078125, %v121_v24  ;;  %v135_v30 = vmul.f32 0.0078125, %v123_v25 }
  0xe6   :  { %718 = vrsqrt.f32 %v165_v28  ;;  %v150_v31 = vsub.f32 %v134_v29, %v142_v27  ;;  %v151_v32 = vsub.f32 %v135_v30, %v143_v23 }
  0xe7   :  { %v92_v33 = vpop.xlane.xlu0 %91  ;;  %v94_v34 = vpop.xlane.xlu1 %93 }
  0xe8   :  { %v166_v37 = vadd.f32 1e-05, %v150_v31  ;;  %v167_v38 = vadd.f32 1e-05, %v151_v32  ;;  %v1011_v39 = vmul.f32 0.0078125, %v92_v33  ;;  %v1013_v40 = vmul.f32 0.0078125, %v94_v34 }
  0xea   :  { %720 = vrsqrt.f32 %v166_v37  ;;  %v145_v42 = vmul.f32 %v1013_v40, %v1013_v40  ;;  %v144_v48 = vmul.f32 %v1011_v39, %v1011_v39  ;;  %v160_v33 = vsub.f32 %v978_v11, %v1011_v39 }
  0xeb   :  { %722 = vrsqrt.f32 %v167_v38  ;;  %v125_v44 = vpop.xlane.xlu0 %124  ;;  %v127_v45 = vpop.xlane.xlu1 %126  ;;  %v161_v36 = vsub.f32 %v980_v12, %v1013_v40 }
  0xec   :  { %v717_v47 = vpop.eup %716  ;;  %v136_v49 = vmul.f32 0.0078125, %v125_v44  ;;  %v137_v50 = vmul.f32 0.0078125, %v127_v45 }
  0xed   :  { %v180_v51 = vmul.f32 %v717_v47, %v156_v43 }
  0xee   :  { %v152_v53 = vsub.f32 %v136_v49, %v144_v48  ;;  %v153_v54 = vsub.f32 %v137_v50, %v145_v42 }
  0xef   :  { %v96_v56 = vpop.xlane.xlu0 %95  ;;  %v98_v57 = vpop.xlane.xlu1 %97  ;;  %v192_v58 = vmul.f32 %v1020_v46, %v180_v51 }
  0xf0   :  { %v719_v59 = vpop.eup %718  ;;  %v168_v60 = vadd.f32 1e-05, %v152_v53  ;;  %v169_v61 = vadd.f32 1e-05, %v153_v54  ;;  %v106_v62 = vmul.f32 0.0078125, %v96_v56  ;;  %v107_v63 = vmul.f32 0.0078125, %v98_v57 }
  0xf1   :  { %v204_v2 = vadd.f32 %v1025_v52, %v192_v58  ;;  %v181_v4 = vmul.f32 %v719_v59, %v157_v55  ;;  %v362_v56 = vld [vmem:[#allocation8 + $0x70] sm:$0xff]  ;;  %v363_v57 = vld [vmem:[#allocation8 + $0x78] sm:$0xff] }
  0xf2   :  { %724 = vrsqrt.f32 %v168_v60  ;;  %v147_v5 = vmul.f32 %v107_v63, %v107_v63  ;;  %v146_v16 = vmul.f32 %v106_v62, %v106_v62  ;;  %v162_v39 = vsub.f32 %v988_v21, %v106_v62  ;;  %v508_v59 = vld [vmem:[%s1085_s3] ss:$0 sm:$0xff]  ;;  %s856_s3 = smov [#allocation10]  }
  0xf3   :  { %726 = vrsqrt.f32 %v169_v61  ;;  %v129_v9 = vpop.xlane.xlu0 %128  ;;  %589 = vmatprep.mubr.f32.mxu0 %v204_v2  ;;  %v131_v6 = vpop.xlane.xlu1 %130  ;;  %v193_v13 = vmul.f32 %v1020_v46, %v181_v4  ;;  %v163_v48 = vsub.f32 %v990_v22, %v107_v63  ;;  %v705_v58 = vpack.c.bf16 %v363_v57, %v362_v56  ;;  %s494_s17 = sshll.u32 %s856_s3, 4  ;;  %s495_s17 = int_to_ptr.vmem [resolvable:$true] %s494_s17 }
  0xf4   :  { %v721_v14 = vpop.eup %720  ;;  %v138_v17 = vmul.f32 0.0078125, %v129_v9  ;;  %v139_v19 = vmul.f32 0.0078125, %v131_v6  ;;  %s820_s18 = scalar_lea.vmem %s495_s17, 1024  ;;  %p825_p5 = scmp.lt.s32.totalorder %s495_s17, %s495_s17 }
  0xf5   :  { %v723_v20 = vpop.eup %722  ;;  %v205_v23 = vadd.f32 %v1025_v52, %v193_v13  ;;  %v182_v24 = vmul.f32 %v721_v14, %v158_v7  ;;  %706 = vmatprep.subr.bf16.mxu1 %v705_v58  ;;  %p821_p4 = scmp.ne.s32.totalorder %s495_s17, %s820_s18  ;;  %p826_p6 = scmp.lt.s32.totalorder %s820_s18, %s820_s18 }
  0xf6   :  { %v154_v25 = vsub.f32 %v138_v17, %v146_v16  ;;  %v155_v27 = vsub.f32 %v139_v19, %v147_v5  ;;  %v183_v18 = vmul.f32 %v723_v20, %v159_v15  ;;  %708 = vmatpush3.bf16.msra.mxu1 %v705_v58 }
  0xf7   :  { %590 = vmatmul.mubr.f32.vlgmr.msra.gmra.mrb[0].mxu0 %v205_v23  ;;  %v194_v28 = vmul.f32 %v1020_v46, %v182_v24  ;;  %p827_p7 = por %p826_p6, %p825_p5 }
  0xf8   :  { %v170_v29 = vadd.f32 1e-05, %v154_v25  ;;  %v171_v30 = vadd.f32 1e-05, %v155_v27  ;;  %v195_v31 = vmul.f32 %v1020_v46, %v183_v18 }
  0xf9   :  { %v206_v32 = vadd.f32 %v1025_v52, %v194_v28  ;;  %v366_v28 = vsub.s32 2, %v1004_v26  ;;  %p828_p8 = pnand %p827_p7, %p821_p4 }
  0xfa   :  { %728 = vrsqrt.f32 %v170_v29  ;;  %v207_v10 = vadd.f32 %v1025_v52, %v195_v31 }
  0xfb   :  { %730 = vrsqrt.f32 %v171_v30  ;;  %592 = vmatprep.mubr.f32.mxu0 %v206_v32  ;;  %v367_v29 = vrot.slane %v1008_v35, %v366_v28 }
  0xfc   :  { %v725_v34 = vpop.eup %724  ;;  %593 = vmatmul.mubr.f32.gmra.mrb[2].mxu0 %v207_v10 }
  0xfd   :  { %v727_v37 = vpop.eup %726  ;;  %v184_v38 = vmul.f32 %v725_v34, %v160_v33 }
  0xfe   :  { %v185_v41 = vmul.f32 %v727_v37, %v161_v36 }
  0xff   :  { %v196_v42 = vmul.f32 %v1020_v46, %v184_v38 }
 0x100   :  { %v197_v43 = vmul.f32 %v1020_v46, %v185_v41 }
 0x101   :  { %v208_v44 = vadd.f32 %v1025_v52, %v196_v42 }
 0x102   :  { %v209_v45 = vadd.f32 %v1025_v52, %v197_v43 }
 0x103   :  { %595 = vmatprep.mubr.f32.mxu0 %v208_v44 }
 0x104   :  { %v729_v47 = vpop.eup %728  ;;  %596 = vmatmul.mubr.f32.gmra.mrb[4].mxu0 %v209_v45 }
 0x105   :  { %v731_v40 = vpop.eup %730  ;;  %v186_v49 = vmul.f32 %v729_v47, %v162_v39 }
 0x106   :  { %v187_v50 = vmul.f32 %v731_v40, %v163_v48 }
 0x107   :  { %v198_v51 = vmul.f32 %v1020_v46, %v186_v49 }
 0x108   :  { %v199_v53 = vmul.f32 %v1020_v46, %v187_v50 }
 0x109   :  { %v210_v54 = vadd.f32 %v1025_v52, %v198_v51 }
 0x10a   :  { %v211_v55 = vadd.f32 %v1025_v52, %v199_v53 }
 0x10b   :  { %598 = vmatprep.mubr.f32.mxu0 %v210_v54 }
 0x10c   :  { %599 = vmatmul.mubr.f32.gmra.mrb[6].mxu0 %v211_v55 }
 0x1ca   :  { %v591_v60 = vpop.f32.mrb[0].mxu0 }
 0x1cb   :  { %v307_v61 = vadd.f32 %v591_v60, %v508_v59  ;;  %v301_v62 = vpop.f32.mrb[1].mxu0 }
 0x1cc   :  { %v302_v63 = vadd.f32 %v508_v59, %v301_v62 }
 0x1cd   :  { %v341_v2 = vmax.f32 %v307_v61, 0.0 }
 0x1ce   :  { %v340_v46 = vmax.f32 %v302_v63, 0.0 }
 0x1cf   :  { %v594_v4 = vpop.f32.mrb[2].mxu0 }
 0x1d0   :  { %v317_v5 = vadd.f32 %v594_v4, %v508_v59  ;;  %v311_v52 = vpop.f32.mrb[3].mxu0  ;;  %633 = vmatprep.mubr.f32.mxu1 %v340_v46 }
 0x1d1   :  { %v312_v7 = vadd.f32 %v508_v59, %v311_v52  ;;  %634 = vmatmul.mubr.f32.vlgmr.msra.gmra.mrb[0].mxu1 %v341_v2 }
 0x1d2   :  { %v343_v6 = vmax.f32 %v317_v5, 0.0 }
 0x1d3   :  { %v342_v9 = vmax.f32 %v312_v7, 0.0 }
 0x1d5   :  { %636 = vmatprep.mubr.f32.mxu1 %v342_v9 }
 0x1d6   :  { %637 = vmatmul.mubr.f32.gmra.mrb[2].mxu1 %v343_v6 }
 0x1d7   :  { %v597_v13 = vpop.f32.mrb[4].mxu0 }
 0x1d8   :  { %v327_v14 = vadd.f32 %v597_v13, %v508_v59  ;;  %v321_v15 = vpop.f32.mrb[5].mxu0 }
 0x1d9   :  { %v322_v16 = vadd.f32 %v508_v59, %v321_v15 }
 0x1da   :  { %v345_v19 = vmax.f32 %v327_v14, 0.0 }
 0x1db   :  { %v344_v17 = vmax.f32 %v322_v16, 0.0 }
 0x1dd   :  { %639 = vmatprep.mubr.f32.mxu1 %v344_v17 }
 0x1de   :  { %640 = vmatmul.mubr.f32.gmra.mrb[4].mxu1 %v345_v19 }
 0x1df   :  { %v600_v20 = vpop.f32.mrb[6].mxu0 }
 0x1e0   :  { %v337_v23 = vadd.f32 %v600_v20, %v508_v59  ;;  %v331_v24 = vpop.f32.mrb[7].mxu0 }
 0x1e1   :  { %v332_v25 = vadd.f32 %v508_v59, %v331_v24 }
 0x1e2   :  { %v347_v18 = vmax.f32 %v337_v23, 0.0 }
 0x1e3   :  { %v346_v27 = vmax.f32 %v332_v25, 0.0 }
 0x1e5   :  { %642 = vmatprep.mubr.f32.mxu1 %v346_v27 }
 0x1e6   :  { %643 = vmatmul.mubr.f32.gmra.mrb[6].mxu1 %v347_v18 }
 0x2a4   :  { %v635_v30 = vpop.f32.mrb[0].mxu1 }
 0x2a5   :  { %v440_v31 = vadd.f32 %v635_v30, %v367_v29  ;;  %v434_v32 = vpop.f32.mrb[1].mxu1 }
 0x2a6   :  { %v435_v10 = vadd.f32 %v434_v32, %v367_v29 }
 0x2a7   :  { %v474_v33 = vadd.f32 %v440_v31, %v966_v3 }
 0x2a8   :  { %v473_v34 = vadd.f32 %v435_v10, %v960_v1 }
 0x2a9   :  { %482 = vst [vmem:[#allocation10 + $0x8] sm:$0xff] %v474_v33  ;;  %v638_v36 = vpop.f32.mrb[2].mxu1 }
 0x2aa   :  { %481 = vst [vmem:[#allocation10] sm:$0xff] %v473_v34  ;;  %v450_v37 = vadd.f32 %v638_v36, %v367_v29  ;;  %v444_v38 = vpop.f32.mrb[3].mxu1 }
 0x2ab   :  { %v445_v41 = vadd.f32 %v444_v38, %v367_v29 }
 0x2ac   :  { %v476_v42 = vadd.f32 %v450_v37, %v958_v0 }
 0x2ad   :  { %v475_v26 = vadd.f32 %v445_v41, %v971_v8 }
 0x2ae   :  { %484 = vst [vmem:[#allocation10 + $0x18] sm:$0xff] %v476_v42 }
 0x2af   :  { %483 = vst [vmem:[#allocation10 + $0x10] sm:$0xff] %v475_v26 }
 0x2b1   :  { %v641_v35 = vpop.f32.mrb[4].mxu1 }
 0x2b2   :  { %v460_v43 = vadd.f32 %v641_v35, %v367_v29  ;;  %v454_v44 = vpop.f32.mrb[5].mxu1 }
 0x2b3   :  { %v455_v45 = vadd.f32 %v454_v44, %v367_v29 }
 0x2b4   :  { %v478_v3 = vadd.f32 %v460_v43, %v980_v12 }
 0x2b5   :  { %v477_v1 = vadd.f32 %v455_v45, %v978_v11 }
 0x2b6   :  { %486 = vst [vmem:[#allocation10 + $0x28] sm:$0xff] %v478_v3 }
 0x2b7   :  { %485 = vst [vmem:[#allocation10 + $0x20] sm:$0xff] %v477_v1 }
 0x2b9   :  { %v644_v39 = vpop.f32.mrb[6].mxu1 }
 0x2ba   :  { %v470_v47 = vadd.f32 %v644_v39, %v367_v29  ;;  %v464_v48 = vpop.f32.mrb[7].mxu1 }
 0x2bb   :  { %v465_v0 = vadd.f32 %v464_v48, %v367_v29 }
 0x2bc   :  { %v480_v8 = vadd.f32 %v470_v47, %v990_v22 }
 0x2bd   :  { %v479_v40 = vadd.f32 %v465_v0, %v988_v21 }
 0x2be   :  { %488 = vst [vmem:[#allocation10 + $0x38] sm:$0xff] %v480_v8 }
 0x2bf   :  { %487 = vst [vmem:[#allocation10 + $0x30] sm:$0xff] %v479_v40 }
 0x2c0   :  { %831 = shalt.err (!%p828_p8)
}
 0x2c1   :  { %s832_s22 = scalar_lea.hbm %s1087_s5, 1024 }
 0x2c2   :  { %p833_p9 = scmp.ne.s32.totalorder %s1087_s5, %s832_s22  ;;  %p836_p10 = scmp.lt.u32.totalorder %s832_s22, %s1087_s5 }
 0x2c4   :  { %p838_p11 = pnand %p836_p10, %p833_p9 }
 0x2c6   :  { %841 = shalt.err (!%p838_p11)
}
 0x2c7   :  { %500 = dma.vmem_to_hbm [thread:$0]  %s495_s17, 1024, %s1087_s5, [#allocation4], %s852_s1, %s852_s1, %s853_s15  }
 0x2c8   :  { %848 = dma.done.wait [#allocation4], 1024  }
 0x2c9   :  { %849 = vsyncadd [#allocation4], 4294966272 }
 0x2ca   :  { %504 = vsyncpa [#allocation3], 1 }
 0x2cb   :  { %505 = vsyncpa [#allocation6], 1 }
 0x2cc   :  { %506 = vsyncpa [#allocation9], 1 }
 0x2cd   :  { %507 = vsyncpa [#allocation4], 1 }

// kernel: tpu_custom_call.1
= control target key start
LH: loop header
LB: loop body
LE: loop exit
PB: predicated region body
PF: predicated region fallthrough
CT: control target
= control target key end

     0   :  { %10 = vsyncpa [#allocation3], 0  ;;  %s1082_s0 = inlined_call_operand.hbm [shape: f32[64,128], index: 0, kind: input, shape index: {}]   ;;  %s1083_s1 = inlined_call_operand.hbm [shape: f32[3,128], index: 1, kind: input, shape index: {}]   ;;  %s1084_s2 = inlined_call_operand.hbm [shape: f32[128,128], index: 2, kind: input, shape index: {}]   ;;  %s1085_s3 = inlined_call_operand.vmem [shape: f32[1,128], index: 3, kind: input, shape index: {}]   ;;  %s1086_s4 = inlined_call_operand.hbm [shape: f32[128,128], index: 4, kind: input, shape index: {}]   ;;  %s1087_s5 = inlined_call_operand.hbm [shape: f32[64,128], index: 5, kind: output, shape index: {}]  }
   0x1   :  { %11 = vsyncpa [#allocation6], 0 }
   0x2   :  { %12 = vsyncpa [#allocation9], 0 }
   0x3   :  { %13 = vsyncpa [#allocation4], 0  ;;  %s850_s18 = smov [#allocation5]   ;;  %s851_s20 = smov [#allocation2]  }
   0x4   :  { %s32_s19 = sshll.u32 %s850_s18, 4  ;;  %s19_s21 = sshll.u32 %s851_s20, 4  ;;  %s33_s19 = int_to_ptr.vmem [resolvable:$true] %s32_s19  ;;  %s887_s21 = int_to_ptr.vmem [resolvable:$true] %s19_s21 }
   0x5   :  { %s732_s24 = scalar_lea.hbm %s1083_s1, 64 }
   0x6   :  { %p733_p0 = scmp.ne.s32.totalorder %s1083_s1, %s732_s24  ;;  %p736_p1 = scmp.lt.u32.totalorder %s732_s24, %s1083_s1 }
   0x8   :  { %p738_p2 = pnand %p736_p1, %p733_p0 }
   0xa   :  { %741 = shalt.err (!%p738_p2)
}
   0xb   :  { %s742_s29 = scalar_lea.vmem %s33_s19, 64  ;;  %p747_p4 = scmp.lt.s32.totalorder %s33_s19, %s33_s19 }
   0xc   :  { %p743_p3 = scmp.ne.s32.totalorder %s33_s19, %s742_s29  ;;  %p748_p5 = scmp.lt.s32.totalorder %s742_s29, %s742_s29 }
   0xe   :  { %p749_p6 = por %p748_p5, %p747_p4 }
  0x10   :  { %p750_p7 = pnand %p749_p6, %p743_p3 }
  0x12   :  { %753 = shalt.err (!%p750_p7)
}
  0x13   :  { %35 = dma.hbm_to_vmem [thread:$0]  %s1083_s1, 64, %s33_s19, [#allocation6]  }
  0x14   :  { %s754_s9 = scalar_lea.hbm %s1082_s0, 1024 }
  0x15   :  { %p755_p8 = scmp.ne.s32.totalorder %s1082_s0, %s754_s9  ;;  %p758_p9 = scmp.lt.u32.totalorder %s754_s9, %s1082_s0 }
  0x17   :  { %p760_p10 = pnand %p758_p9, %p755_p8 }
  0x19   :  { %763 = shalt.err (!%p760_p10)
}
  0x1a   :  { %s764_s14 = scalar_lea.vmem %s887_s21, 1024  ;;  %p769_p12 = scmp.lt.s32.totalorder %s887_s21, %s887_s21 }
  0x1b   :  { %p765_p11 = scmp.ne.s32.totalorder %s887_s21, %s764_s14  ;;  %p770_p13 = scmp.lt.s32.totalorder %s764_s14, %s764_s14 }
  0x1d   :  { %p771_p0 = por %p770_p13, %p769_p12 }
  0x1f   :  { %p772_p1 = pnand %p771_p0, %p765_p11 }
  0x21   :  { %775 = shalt.err (!%p772_p1)
}
  0x22   :  { %s852_s1 = smov 128   ;;  %s853_s15 = smov 8  }
  0x23   :  { %25 = dma.hbm_to_vmem [thread:$0]  %s1082_s0, 1024, %s887_s21, [#allocation3], %s852_s1, %s852_s1, %s853_s15  }
  0x24   :  { %s854_s18 = smov [#allocation7]   ;;  %s855_s20 = smov [#allocation8]  }
  0x25   :  { %s41_s19 = sshll.u32 %s854_s18, 4  ;;  %s55_s22 = sshll.u32 %s855_s20, 4  ;;  %s42_s19 = int_to_ptr.vmem [resolvable:$true] %s41_s19  ;;  %s921_s22 = int_to_ptr.vmem [resolvable:$true] %s55_s22 }
  0x26   :  { %s776_s25 = scalar_lea.hbm %s1084_s2, 2048 }
  0x27   :  { %p777_p2 = scmp.ne.s32.totalorder %s1084_s2, %s776_s25  ;;  %p780_p3 = scmp.lt.u32.totalorder %s776_s25, %s1084_s2 }
  0x29   :  { %p782_p4 = pnand %p780_p3, %p777_p2 }
  0x2b   :  { %785 = shalt.err (!%p782_p4)
}
  0x2c   :  { %s786_s0 = scalar_lea.vmem %s42_s19, 2048  ;;  %p791_p6 = scmp.lt.s32.totalorder %s42_s19, %s42_s19 }
  0x2d   :  { %p787_p5 = scmp.ne.s32.totalorder %s42_s19, %s786_s0  ;;  %p792_p7 = scmp.lt.s32.totalorder %s786_s0, %s786_s0 }
  0x2f   :  { %p793_p8 = por %p792_p7, %p791_p6 }
  0x31   :  { %p794_p9 = pnand %p793_p8, %p787_p5 }
  0x33   :  { %797 = shalt.err (!%p794_p9)
}
  0x34   :  { %47 = dma.hbm_to_vmem [thread:$0]  %s1084_s2, 2048, %s42_s19, [#allocation6], %s852_s1, %s852_s1, %s853_s15  }
  0x35   :  { %s798_s8 = scalar_lea.hbm %s1086_s4, 2048 }
  0x36   :  { %p799_p10 = scmp.ne.s32.totalorder %s1086_s4, %s798_s8  ;;  %p802_p11 = scmp.lt.u32.totalorder %s798_s8, %s1086_s4 }
  0x38   :  { %p804_p12 = pnand %p802_p11, %p799_p10 }
  0x3a   :  { %807 = shalt.err (!%p804_p12)
}
  0x3b   :  { %s808_s13 = scalar_lea.vmem %s921_s22, 2048  ;;  %p813_p0 = scmp.lt.s32.totalorder %s921_s22, %s921_s22 }
  0x3c   :  { %p809_p13 = scmp.ne.s32.totalorder %s921_s22, %s808_s13  ;;  %p814_p1 = scmp.lt.s32.totalorder %s808_s13, %s808_s13 }
  0x3e   :  { %p815_p2 = por %p814_p1, %p813_p0 }
  0x40   :  { %p816_p3 = pnand %p815_p2, %p809_p13 }
  0x42   :  { %819 = shalt.err (!%p816_p3)
}
  0x43   :  { %61 = dma.hbm_to_vmem [thread:$0]  %s1086_s4, 2048, %s921_s22, [#allocation9], %s852_s1, %s852_s1, %s853_s15  }
  0x44   :  { %842 = dma.done.wait [#allocation3], 1024  }
  0x45   :  { %843 = vsyncadd [#allocation3], 4294966272 }
  0x46   :  { %844 = dma.done.wait [#allocation6], 2112  }
  0x47   :  { %845 = vsyncadd [#allocation6], 4294965184 }
  0x48   :  { %846 = dma.done.wait [#allocation9], 2048  }
  0x49   :  { %847 = vsyncadd [#allocation9], 4294965248  ;;  %v958_v0 = vld [vmem:[#allocation2 + $0x18] sm:$0xff]  ;;  %v960_v1 = vld [vmem:[#allocation2] sm:$0xff] }
  0x4a   :  { %89 = vadd.xlane.f32.xlu1 %v958_v0  ;;  %83 = vadd.xlane.f32.xlu0 %v960_v1  ;;  %v108_v2 = vmul.f32 %v960_v1, %v960_v1  ;;  %v966_v3 = vld [vmem:[#allocation2 + $0x8] sm:$0xff]  ;;  %v971_v8 = vld [vmem:[#allocation2 + $0x10] sm:$0xff]  ;;  %v111_v10 = vmul.f32 %v958_v0, %v958_v0  ;;  %v978_v11 = vld [vmem:[#allocation2 + $0x20] sm:$0xff] }
  0x4b   :  { %v212_v4 = vld [vmem:[#allocation7] sm:$0xff]  ;;  %v213_v5 = vld [vmem:[#allocation7 + $0x8] sm:$0xff]  ;;  %v109_v7 = vmul.f32 %v966_v3, %v966_v3  ;;  %v110_v9 = vmul.f32 %v971_v8, %v971_v8  ;;  %v214_v13 = vld [vmem:[#allocation7 + $0x10] sm:$0xff]  ;;  %v112_v16 = vmul.f32 %v978_v11, %v978_v11 }
  0x4c   :  { %v645_v6 = vpack.c.bf16 %v213_v5, %v212_v4  ;;  %v980_v12 = vld [vmem:[#allocation2 + $0x28] sm:$0xff]  ;;  %v215_v14 = vld [vmem:[#allocation7 + $0x18] sm:$0xff]  ;;  %v988_v21 = vld [vmem:[#allocation2 + $0x30] sm:$0xff] }
  0x4d   :  { %v649_v15 = vpack.c.bf16 %v215_v14, %v214_v13  ;;  %v113_v17 = vmul.f32 %v980_v12, %v980_v12  ;;  %v216_v18 = vld [vmem:[#allocation7 + $0x20] sm:$0xff]  ;;  %v217_v19 = vld [vmem:[#allocation7 + $0x28] sm:$0xff]  ;;  %v990_v22 = vld [vmem:[#allocation2 + $0x38] sm:$0xff]  ;;  %v114_v26 = vmul.f32 %v988_v21, %v988_v21 }
  0x4e   :  { %85 = vadd.xlane.f32.xlu0 %v966_v3  ;;  %116 = vadd.xlane.f32.xlu1 %v108_v2  ;;  %v653_v20 = vpack.c.bf16 %v217_v19, %v216_v18  ;;  %v218_v23 = vld [vmem:[#allocation7 + $0x30] sm:$0xff]  ;;  %v219_v24 = vld [vmem:[#allocation7 + $0x38] sm:$0xff]  ;;  %v115_v27 = vmul.f32 %v990_v22, %v990_v22  ;;  %v220_v28 = vld [vmem:[#allocation7 + $0x40] sm:$0xff] }
  0x4f   :  { %646 = vmatprep.subr.bf16.mxu0 %v645_v6  ;;  %v657_v25 = vpack.c.bf16 %v219_v24, %v218_v23  ;;  %v221_v29 = vld [vmem:[#allocation7 + $0x48] sm:$0xff]  ;;  %v222_v31 = vld [vmem:[#allocation7 + $0x50] sm:$0xff]  ;;  %v223_v32 = vld [vmem:[#allocation7 + $0x58] sm:$0xff] }
  0x50   :  { %648 = vmatpush3.bf16.msra.mxu0 %v645_v6  ;;  %v661_v30 = vpack.c.bf16 %v221_v29, %v220_v28  ;;  %v665_v33 = vpack.c.bf16 %v223_v32, %v222_v31  ;;  %v224_v34 = vld [vmem:[#allocation7 + $0x60] sm:$0xff]  ;;  %v225_v35 = vld [vmem:[#allocation7 + $0x68] sm:$0xff]  ;;  %v226_v37 = vld [vmem:[#allocation7 + $0x70] sm:$0xff] }
  0x51   :  { %650 = vmatprep.subr.bf16.mxu0 %v649_v15  ;;  %v669_v36 = vpack.c.bf16 %v225_v35, %v224_v34  ;;  %v227_v38 = vld [vmem:[#allocation7 + $0x78] sm:$0xff]  ;;  %v348_v40 = vld [vmem:[#allocation8] sm:$0xff]  ;;  %v349_v41 = vld [vmem:[#allocation8 + $0x8] sm:$0xff] }
  0x52   :  { %87 = vadd.xlane.f32.xlu0 %v971_v8  ;;  %118 = vadd.xlane.f32.xlu1 %v109_v7  ;;  %v673_v39 = vpack.c.bf16 %v227_v38, %v226_v37  ;;  %v350_v42 = vld [vmem:[#allocation8 + $0x10] sm:$0xff]  ;;  %v677_v43 = vpack.c.bf16 %v349_v41, %v348_v40  ;;  %v351_v44 = vld [vmem:[#allocation8 + $0x18] sm:$0xff]  ;;  %v352_v46 = vld [vmem:[#allocation8 + $0x20] sm:$0xff] }
  0x53   :  { %v681_v45 = vpack.c.bf16 %v351_v44, %v350_v42  ;;  %v353_v47 = vld [vmem:[#allocation8 + $0x28] sm:$0xff]  ;;  %v354_v49 = vld [vmem:[#allocation8 + $0x30] sm:$0xff]  ;;  %v355_v50 = vld [vmem:[#allocation8 + $0x38] sm:$0xff] }
  0x54   :  { %652 = vmatpush3.bf16.msra.mxu0 %v649_v15  ;;  %678 = vmatprep.subr.bf16.mxu1 %v677_v43  ;;  %v685_v48 = vpack.c.bf16 %v353_v47, %v352_v46  ;;  %v689_v51 = vpack.c.bf16 %v355_v50, %v354_v49  ;;  %v356_v52 = vld [vmem:[#allocation8 + $0x40] sm:$0xff]  ;;  %v357_v53 = vld [vmem:[#allocation8 + $0x48] sm:$0xff]  ;;  %v358_v55 = vld [vmem:[#allocation8 + $0x50] sm:$0xff]  ;;  %v188_v15 = vlaneseq }
  0x55   :  { %654 = vmatprep.subr.bf16.mxu0 %v653_v20  ;;  %680 = vmatpush3.bf16.msra.mxu1 %v677_v43  ;;  %v693_v54 = vpack.c.bf16 %v357_v53, %v356_v52  ;;  %v359_v56 = vld [vmem:[#allocation8 + $0x58] sm:$0xff]  ;;  %v360_v58 = vld [vmem:[#allocation8 + $0x60] sm:$0xff]  ;;  %v361_v59 = vld [vmem:[#allocation8 + $0x68] sm:$0xff] }
  0x56   :  { %120 = vadd.xlane.f32.xlu0 %v110_v9  ;;  %122 = vadd.xlane.f32.xlu1 %v111_v10  ;;  %v697_v57 = vpack.c.bf16 %v359_v56, %v358_v55  ;;  %v701_v60 = vpack.c.bf16 %v361_v59, %v360_v58  ;;  %v1008_v35 = vld [vmem:[#allocation5] sm:$0x7] }
  0x57   :  { %682 = vmatprep.subr.bf16.mxu1 %v681_v45 }
  0x58   :  { %656 = vmatpush3.bf16.msra.mxu0 %v653_v20 }
  0x59   :  { %658 = vmatprep.subr.bf16.mxu0 %v657_v25  ;;  %684 = vmatpush3.bf16.msra.mxu1 %v681_v45 }
  0x5a   :  { %91 = vadd.xlane.f32.xlu0 %v978_v11  ;;  %93 = vadd.xlane.f32.xlu1 %v980_v12 }
  0x5b   :  { %686 = vmatprep.subr.bf16.mxu1 %v685_v48 }
  0x5c   :  { %660 = vmatpush3.bf16.msra.mxu0 %v657_v25 }
  0x5d   :  { %662 = vmatprep.subr.bf16.mxu0 %v661_v30  ;;  %688 = vmatpush3.bf16.msra.mxu1 %v685_v48 }
  0x5e   :  { %124 = vadd.xlane.f32.xlu0 %v112_v16  ;;  %126 = vadd.xlane.f32.xlu1 %v113_v17 }
  0x5f   :  { %690 = vmatprep.subr.bf16.mxu1 %v689_v51 }
  0x60   :  { %664 = vmatpush3.bf16.msra.mxu0 %v661_v30 }
  0x61   :  { %666 = vmatprep.subr.bf16.mxu0 %v665_v33  ;;  %692 = vmatpush3.bf16.msra.mxu1 %v689_v51 }
  0x62   :  { %95 = vadd.xlane.f32.xlu0 %v988_v21  ;;  %97 = vadd.xlane.f32.xlu1 %v990_v22 }
  0x63   :  { %694 = vmatprep.subr.bf16.mxu1 %v693_v54 }
  0x64   :  { %668 = vmatpush3.bf16.msra.mxu0 %v665_v33 }
  0x65   :  { %670 = vmatprep.subr.bf16.mxu0 %v669_v36  ;;  %696 = vmatpush3.bf16.msra.mxu1 %v693_v54 }
  0x66   :  { %128 = vadd.xlane.f32.xlu0 %v114_v26  ;;  %130 = vadd.xlane.f32.xlu1 %v115_v27  ;;  %v1004_v26 = vshrl.u32 %v188_v15, 7 }
  0x67   :  { %698 = vmatprep.subr.bf16.mxu1 %v697_v57 }
  0x68   :  { %672 = vmatpush3.bf16.msra.mxu0 %v669_v36  ;;  %v190_v36 = vsub.s32 0, %v1004_v26  ;;  %v202_v41 = vsub.s32 1, %v1004_v26 }
  0x69   :  { %674 = vmatprep.subr.bf16.mxu0 %v673_v39  ;;  %700 = vmatpush3.bf16.msra.mxu1 %v697_v57 }
  0x6a   :  { %702 = vmatprep.subr.bf16.mxu1 %v701_v60  ;;  %v1020_v46 = vrot.slane %v1008_v35, %v190_v36  ;;  %v1025_v52 = vrot.slane %v1008_v35, %v202_v41 }
  0x6c   :  { %676 = vmatpush3.bf16.msra.mxu0 %v673_v39 }
  0x6d   :  { %704 = vmatpush3.bf16.msra.mxu1 %v701_v60 }
  0xd7   :  { %v90_v61 = vpop.xlane.xlu1 %89  ;;  %v84_v62 = vpop.xlane.xlu0 %83 }
  0xd8   :  { %v100_v63 = vmul.f32 0.0078125, %v84_v62  ;;  %v998_v10 = vmul.f32 0.0078125, %v90_v61 }
  0xda   :  { %v140_v5 = vmul.f32 %v100_v63, %v100_v63  ;;  %v143_v23 = vmul.f32 %v998_v10, %v998_v10  ;;  %v156_v43 = vsub.f32 %v960_v1, %v100_v63  ;;  %v159_v15 = vsub.f32 %v958_v0, %v998_v10 }
  0xdb   :  { %v86_v2 = vpop.xlane.xlu0 %85  ;;  %v117_v4 = vpop.xlane.xlu1 %116 }
  0xdc   :  { %v101_v6 = vmul.f32 0.0078125, %v86_v2  ;;  %v132_v7 = vmul.f32 0.0078125, %v117_v4 }
  0xde   :  { %v148_v9 = vsub.f32 %v132_v7, %v140_v5  ;;  %v141_v16 = vmul.f32 %v101_v6, %v101_v6  ;;  %v157_v55 = vsub.f32 %v966_v3, %v101_v6 }
  0xdf   :  { %v88_v13 = vpop.xlane.xlu0 %87  ;;  %v119_v14 = vpop.xlane.xlu1 %118 }
  0xe0   :  { %v164_v17 = vadd.f32 1e-05, %v148_v9  ;;  %v1000_v18 = vmul.f32 0.0078125, %v88_v13  ;;  %v133_v19 = vmul.f32 0.0078125, %v119_v14 }
  0xe2   :  { %716 = vrsqrt.f32 %v164_v17  ;;  %v149_v20 = vsub.f32 %v133_v19, %v141_v16  ;;  %v142_v27 = vmul.f32 %v1000_v18, %v1000_v18  ;;  %v158_v7 = vsub.f32 %v971_v8, %v1000_v18 }
  0xe3   :  { %v121_v24 = vpop.xlane.xlu0 %120  ;;  %v123_v25 = vpop.xlane.xlu1 %122 }
  0xe4   :  { %v165_v28 = vadd.f32 1e-05, %v149_v20  ;;  %v134_v29 = vmul.f32 0.0078125, %v121_v24  ;;  %v135_v30 = vmul.f32 0.0078125, %v123_v25 }
  0xe6   :  { %718 = vrsqrt.f32 %v165_v28  ;;  %v150_v31 = vsub.f32 %v134_v29, %v142_v27  ;;  %v151_v32 = vsub.f32 %v135_v30, %v143_v23 }
  0xe7   :  { %v92_v33 = vpop.xlane.xlu0 %91  ;;  %v94_v34 = vpop.xlane.xlu1 %93 }
  0xe8   :  { %v166_v37 = vadd.f32 1e-05, %v150_v31  ;;  %v167_v38 = vadd.f32 1e-05, %v151_v32  ;;  %v1011_v39 = vmul.f32 0.0078125, %v92_v33  ;;  %v1013_v40 = vmul.f32 0.0078125, %v94_v34 }
  0xea   :  { %720 = vrsqrt.f32 %v166_v37  ;;  %v145_v42 = vmul.f32 %v1013_v40, %v1013_v40  ;;  %v144_v48 = vmul.f32 %v1011_v39, %v1011_v39  ;;  %v160_v33 = vsub.f32 %v978_v11, %v1011_v39 }
  0xeb   :  { %722 = vrsqrt.f32 %v167_v38  ;;  %v125_v44 = vpop.xlane.xlu0 %124  ;;  %v127_v45 = vpop.xlane.xlu1 %126  ;;  %v161_v36 = vsub.f32 %v980_v12, %v1013_v40 }
  0xec   :  { %v717_v47 = vpop.eup %716  ;;  %v136_v49 = vmul.f32 0.0078125, %v125_v44  ;;  %v137_v50 = vmul.f32 0.0078125, %v127_v45 }
  0xed   :  { %v180_v51 = vmul.f32 %v717_v47, %v156_v43 }
  0xee   :  { %v152_v53 = vsub.f32 %v136_v49, %v144_v48  ;;  %v153_v54 = vsub.f32 %v137_v50, %v145_v42 }
  0xef   :  { %v96_v56 = vpop.xlane.xlu0 %95  ;;  %v98_v57 = vpop.xlane.xlu1 %97  ;;  %v192_v58 = vmul.f32 %v1020_v46, %v180_v51 }
  0xf0   :  { %v719_v59 = vpop.eup %718  ;;  %v168_v60 = vadd.f32 1e-05, %v152_v53  ;;  %v169_v61 = vadd.f32 1e-05, %v153_v54  ;;  %v106_v62 = vmul.f32 0.0078125, %v96_v56  ;;  %v107_v63 = vmul.f32 0.0078125, %v98_v57 }
  0xf1   :  { %v204_v2 = vadd.f32 %v1025_v52, %v192_v58  ;;  %v181_v4 = vmul.f32 %v719_v59, %v157_v55  ;;  %v362_v56 = vld [vmem:[#allocation8 + $0x70] sm:$0xff]  ;;  %v363_v57 = vld [vmem:[#allocation8 + $0x78] sm:$0xff] }
  0xf2   :  { %724 = vrsqrt.f32 %v168_v60  ;;  %v147_v5 = vmul.f32 %v107_v63, %v107_v63  ;;  %v146_v16 = vmul.f32 %v106_v62, %v106_v62  ;;  %v162_v39 = vsub.f32 %v988_v21, %v106_v62  ;;  %v508_v59 = vld [vmem:[%s1085_s3] ss:$0 sm:$0xff]  ;;  %s856_s3 = smov [#allocation10]  }
  0xf3   :  { %726 = vrsqrt.f32 %v169_v61  ;;  %v129_v9 = vpop.xlane.xlu0 %128  ;;  %589 = vmatprep.mubr.f32.mxu0 %v204_v2  ;;  %v131_v6 = vpop.xlane.xlu1 %130  ;;  %v193_v13 = vmul.f32 %v1020_v46, %v181_v4  ;;  %v163_v48 = vsub.f32 %v990_v22, %v107_v63  ;;  %v705_v58 = vpack.c.bf16 %v363_v57, %v362_v56  ;;  %s494_s17 = sshll.u32 %s856_s3, 4  ;;  %s495_s17 = int_to_ptr.vmem [resolvable:$true] %s494_s17 }
  0xf4   :  { %v721_v14 = vpop.eup %720  ;;  %v138_v17 = vmul.f32 0.0078125, %v129_v9  ;;  %v139_v19 = vmul.f32 0.0078125, %v131_v6  ;;  %s820_s18 = scalar_lea.vmem %s495_s17, 1024  ;;  %p825_p5 = scmp.lt.s32.totalorder %s495_s17, %s495_s17 }
  0xf5   :  { %v723_v20 = vpop.eup %722  ;;  %v205_v23 = vadd.f32 %v1025_v52, %v193_v13  ;;  %v182_v24 = vmul.f32 %v721_v14, %v158_v7  ;;  %706 = vmatprep.subr.bf16.mxu1 %v705_v58  ;;  %p821_p4 = scmp.ne.s32.totalorder %s495_s17, %s820_s18  ;;  %p826_p6 = scmp.lt.s32.totalorder %s820_s18, %s820_s18 }
  0xf6   :  { %v154_v25 = vsub.f32 %v138_v17, %v146_v16  ;;  %v155_v27 = vsub.f32 %v139_v19, %v147_v5  ;;  %v183_v18 = vmul.f32 %v723_v20, %v159_v15  ;;  %708 = vmatpush3.bf16.msra.mxu1 %v705_v58 }
  0xf7   :  { %590 = vmatmul.mubr.f32.vlgmr.msra.gmra.mrb[0].mxu0 %v205_v23  ;;  %v194_v28 = vmul.f32 %v1020_v46, %v182_v24  ;;  %p827_p7 = por %p826_p6, %p825_p5 }
  0xf8   :  { %v170_v29 = vadd.f32 1e-05, %v154_v25  ;;  %v171_v30 = vadd.f32 1e-05, %v155_v27  ;;  %v195_v31 = vmul.f32 %v1020_v46, %v183_v18 }
  0xf9   :  { %v206_v32 = vadd.f32 %v1025_v52, %v194_v28  ;;  %v366_v28 = vsub.s32 2, %v1004_v26  ;;  %p828_p8 = pnand %p827_p7, %p821_p4 }
  0xfa   :  { %728 = vrsqrt.f32 %v170_v29  ;;  %v207_v10 = vadd.f32 %v1025_v52, %v195_v31 }
  0xfb   :  { %730 = vrsqrt.f32 %v171_v30  ;;  %592 = vmatprep.mubr.f32.mxu0 %v206_v32  ;;  %v367_v29 = vrot.slane %v1008_v35, %v366_v28 }
  0xfc   :  { %v725_v34 = vpop.eup %724  ;;  %593 = vmatmul.mubr.f32.gmra.mrb[2].mxu0 %v207_v10 }
  0xfd   :  { %v727_v37 = vpop.eup %726  ;;  %v184_v38 = vmul.f32 %v725_v34, %v160_v33 }
  0xfe   :  { %v185_v41 = vmul.f32 %v727_v37, %v161_v36 }
  0xff   :  { %v196_v42 = vmul.f32 %v1020_v46, %v184_v38 }
 0x100   :  { %v197_v43 = vmul.f32 %v1020_v46, %v185_v41 }
 0x101   :  { %v208_v44 = vadd.f32 %v1025_v52, %v196_v42 }
 0x102   :  { %v209_v45 = vadd.f32 %v1025_v52, %v197_v43 }
 0x103   :  { %595 = vmatprep.mubr.f32.mxu0 %v208_v44 }
 0x104   :  { %v729_v47 = vpop.eup %728  ;;  %596 = vmatmul.mubr.f32.gmra.mrb[4].mxu0 %v209_v45 }
 0x105   :  { %v731_v40 = vpop.eup %730  ;;  %v186_v49 = vmul.f32 %v729_v47, %v162_v39 }
 0x106   :  { %v187_v50 = vmul.f32 %v731_v40, %v163_v48 }
 0x107   :  { %v198_v51 = vmul.f32 %v1020_v46, %v186_v49 }
 0x108   :  { %v199_v53 = vmul.f32 %v1020_v46, %v187_v50 }
 0x109   :  { %v210_v54 = vadd.f32 %v1025_v52, %v198_v51 }
 0x10a   :  { %v211_v55 = vadd.f32 %v1025_v52, %v199_v53 }
 0x10b   :  { %598 = vmatprep.mubr.f32.mxu0 %v210_v54 }
 0x10c   :  { %599 = vmatmul.mubr.f32.gmra.mrb[6].mxu0 %v211_v55 }
 0x1ca   :  { %v591_v60 = vpop.f32.mrb[0].mxu0 }
 0x1cb   :  { %v307_v61 = vadd.f32 %v591_v60, %v508_v59  ;;  %v301_v62 = vpop.f32.mrb[1].mxu0 }
 0x1cc   :  { %v302_v63 = vadd.f32 %v508_v59, %v301_v62 }
 0x1cd   :  { %v341_v2 = vmax.f32 %v307_v61, 0.0 }
 0x1ce   :  { %v340_v46 = vmax.f32 %v302_v63, 0.0 }
 0x1cf   :  { %v594_v4 = vpop.f32.mrb[2].mxu0 }
 0x1d0   :  { %v317_v5 = vadd.f32 %v594_v4, %v508_v59  ;;  %v311_v52 = vpop.f32.mrb[3].mxu0  ;;  %633 = vmatprep.mubr.f32.mxu1 %v340_v46 }
 0x1d1   :  { %v312_v7 = vadd.f32 %v508_v59, %v311_v52  ;;  %634 = vmatmul.mubr.f32.vlgmr.msra.gmra.mrb[0].mxu1 %v341_v2 }
 0x1d2   :  { %v343_v6 = vmax.f32 %v317_v5, 0.0 }
 0x1d3   :  { %v342_v9 = vmax.f32 %v312_v7, 0.0 }
 0x1d5   :  { %636 = vmatprep.mubr.f32.mxu1 %v342_v9 }
 0x1d6   :  { %637 = vmatmul.mubr.f32.gmra.mrb[2].mxu1 %v343_v6 }
 0x1d7   :  { %v597_v13 = vpop.f32.mrb[4].mxu0 }
 0x1d8   :  { %v327_v14 = vadd.f32 %v597_v13, %v508_v59  ;;  %v321_v15 = vpop.f32.mrb[5].mxu0 }
 0x1d9   :  { %v322_v16 = vadd.f32 %v508_v59, %v321_v15 }
 0x1da   :  { %v345_v19 = vmax.f32 %v327_v14, 0.0 }
 0x1db   :  { %v344_v17 = vmax.f32 %v322_v16, 0.0 }
 0x1dd   :  { %639 = vmatprep.mubr.f32.mxu1 %v344_v17 }
 0x1de   :  { %640 = vmatmul.mubr.f32.gmra.mrb[4].mxu1 %v345_v19 }
 0x1df   :  { %v600_v20 = vpop.f32.mrb[6].mxu0 }
 0x1e0   :  { %v337_v23 = vadd.f32 %v600_v20, %v508_v59  ;;  %v331_v24 = vpop.f32.mrb[7].mxu0 }
 0x1e1   :  { %v332_v25 = vadd.f32 %v508_v59, %v331_v24 }
 0x1e2   :  { %v347_v18 = vmax.f32 %v337_v23, 0.0 }
 0x1e3   :  { %v346_v27 = vmax.f32 %v332_v25, 0.0 }
 0x1e5   :  { %642 = vmatprep.mubr.f32.mxu1 %v346_v27 }
 0x1e6   :  { %643 = vmatmul.mubr.f32.gmra.mrb[6].mxu1 %v347_v18 }
 0x2a4   :  { %v635_v30 = vpop.f32.mrb[0].mxu1 }
 0x2a5   :  { %v440_v31 = vadd.f32 %v635_v30, %v367_v29  ;;  %v434_v32 = vpop.f32.mrb[1].mxu1 }
 0x2a6   :  { %v435_v10 = vadd.f32 %v434_v32, %v367_v29 }
 0x2a7   :  { %v474_v33 = vadd.f32 %v440_v31, %v966_v3 }
 0x2a8   :  { %v473_v34 = vadd.f32 %v435_v10, %v960_v1 }
 0x2a9   :  { %482 = vst [vmem:[#allocation10 + $0x8] sm:$0xff] %v474_v33  ;;  %v638_v36 = vpop.f32.mrb[2].mxu1 }
 0x2aa   :  { %481 = vst [vmem:[#allocation10] sm:$0xff] %v473_v34  ;;  %v450_v37 = vadd.f32 %v638_v36, %v367_v29  ;;  %v444_v38 = vpop.f32.mrb[3].mxu1 }
 0x2ab   :  { %v445_v41 = vadd.f32 %v444_v38, %v367_v29 }
 0x2ac   :  { %v476_v42 = vadd.f32 %v450_v37, %v958_v0 }
 0x2ad   :  { %v475_v26 = vadd.f32 %v445_v41, %v971_v8 }
 0x2ae   :  { %484 = vst [vmem:[#allocation10 + $0x18] sm:$0xff] %v476_v42 }
 0x2af   :  { %483 = vst [vmem:[#allocation10 + $0x10] sm:$0xff] %v475_v26 }
 0x2b1   :  { %v641_v35 = vpop.f32.mrb[4].mxu1 }
 0x2b2   :  { %v460_v43 = vadd.f32 %v641_v35, %v367_v29  ;;  %v454_v44 = vpop.f32.mrb[5].mxu1 }
 0x2b3   :  { %v455_v45 = vadd.f32 %v454_v44, %v367_v29 }
 0x2b4   :  { %v478_v3 = vadd.f32 %v460_v43, %v980_v12 }
 0x2b5   :  { %v477_v1 = vadd.f32 %v455_v45, %v978_v11 }
 0x2b6   :  { %486 = vst [vmem:[#allocation10 + $0x28] sm:$0xff] %v478_v3 }
 0x2b7   :  { %485 = vst [vmem:[#allocation10 + $0x20] sm:$0xff] %v477_v1 }
 0x2b9   :  { %v644_v39 = vpop.f32.mrb[6].mxu1 }
 0x2ba   :  { %v470_v47 = vadd.f32 %v644_v39, %v367_v29  ;;  %v464_v48 = vpop.f32.mrb[7].mxu1 }
 0x2bb   :  { %v465_v0 = vadd.f32 %v464_v48, %v367_v29 }
 0x2bc   :  { %v480_v8 = vadd.f32 %v470_v47, %v990_v22 }
 0x2bd   :  { %v479_v40 = vadd.f32 %v465_v0, %v988_v21 }
 0x2be   :  { %488 = vst [vmem:[#allocation10 + $0x38] sm:$0xff] %v480_v8 }
 0x2bf   :  { %487 = vst [vmem:[#allocation10 + $0x30] sm:$0xff] %v479_v40 }
 0x2c0   :  { %831 = shalt.err (!%p828_p8)
}
 0x2c1   :  { %s832_s22 = scalar_lea.hbm %s1087_s5, 1024 }
 0x2c2   :  { %p833_p9 = scmp.ne.s32.totalorder %s1087_s5, %s832_s22  ;;  %p836_p10 = scmp.lt.u32.totalorder %s832_s22, %s1087_s5 }
 0x2c4   :  { %p838_p11 = pnand %p836_p10, %p833_p9 }
 0x2c6   :  { %841 = shalt.err (!%p838_p11)
}
 0x2c7   :  { %500 = dma.vmem_to_hbm [thread:$0]  %s495_s17, 1024, %s1087_s5, [#allocation4], %s852_s1, %s852_s1, %s853_s15  }
 0x2c8   :  { %848 = dma.done.wait [#allocation4], 1024  }
 0x2c9   :  { %849 = vsyncadd [#allocation4], 4294966272 }
 0x2ca   :  { %504 = vsyncpa [#allocation3], 1 }
 0x2cb   :  { %505 = vsyncpa [#allocation6], 1 }
 0x2cc   :  { %506 = vsyncpa [#allocation9], 1 }
 0x2cd   :  { %507 = vsyncpa [#allocation4], 1 }

</bundles_post_ra>
